<compile_context>
chip_gen: v7x
topology: tpu7x:2x2x1
jax: 0.10.0
libtpu: 0.0.40
codegen_flags: <defaults>
</compile_context>

<pallas_src>
import functools

import jax
import jax.numpy as jnp
from jax import lax
from jax.experimental import pallas as pl
from jax.experimental.pallas import tpu as pltpu


def _round_up(x, m):
    return (x + m - 1) // m * m


# --------------------------------------------------------------------------
# Kernel
# --------------------------------------------------------------------------
def _make_kernel(row_offsets, num_categories, matmul_dtype):
    """out = cont @ W_fused + onehot @ T_stacked + b_fused  (one batch tile)."""
    n_feat = len(row_offsets)

    def kernel(cont_ref, idx_ref, wf_ref, t_ref, bf_ref, out_ref):
        tb = cont_ref.shape[0]           # batch tile rows
        n_rows = t_ref.shape[0]          # stacked (padded) table rows

        # (1) Continuous path: cont arrives f32; cast to bf16 here (VPU, free
        #     under the MXU/DMA) -> one MXU matmul with f32 accumulation.
        acc = jnp.dot(cont_ref[...].astype(matmul_dtype), wf_ref[...],
                      preferred_element_type=jnp.float32)        # (tb, D) f32

        # (2) Categorical path: ONE stacked one-hot + ONE MXU matmul.
        #     Feature row-ranges in t_ref are disjoint, so K boolean masks are
        #     OR'd and cast to bf16 once.  Indices are clamped per feature so
        #     a bad index cannot alias into another feature's rows.
        idx = idx_ref[...]                                       # (tb, K) i32
        col_ids = lax.broadcasted_iota(jnp.int32, (tb, n_rows), 1)
        hit = None
        for k in range(n_feat):                                  # static K
            idx_k = jnp.clip(idx[:, k:k + 1], 0, num_categories[k] - 1)
            m = col_ids == (idx_k + row_offsets[k])
            hit = m if hit is None else jnp.logical_or(hit, m)
        onehot = hit.astype(matmul_dtype)                        # (tb, n_rows)
        acc = acc + jnp.dot(onehot, t_ref[...],
                            preferred_element_type=jnp.float32)

        # (3) Exact f32 bias add; store at the true output width (no lane pad).
        out_ref[...] = (acc + bf_ref[...]).astype(out_ref.dtype)

    return kernel


# --------------------------------------------------------------------------
# Parameter init (PyTorch-equivalent layout) and one-time offline fold
# --------------------------------------------------------------------------
def init_params(key, continuous_dim, categorical_info, output_dim):
    """Deterministic parameter init (weights stored as (in, out))."""
    half = output_dim // 2
    keys = jax.random.split(key, 3 + len(categorical_info))
    params = {
        "w1": jax.random.normal(keys[0], (continuous_dim, half),
                                jnp.float32) * 0.1,
        "b1": jax.random.normal(keys[1], (1, half), jnp.float32) * 0.1,
        "w2": jax.random.normal(
            keys[2],
            (half + sum(i['embedding_dim'] for i in categorical_info.values()),
             output_dim), jnp.float32) * 0.1,
        "b2": jnp.zeros((1, output_dim), jnp.float32),
        "embeddings": {},
    }
    for i, (name, info) in enumerate(categorical_info.items()):
        params["embeddings"][name] = jax.random.normal(
            keys[3 + i], (info['num_categories'], info['embedding_dim']),
            jnp.float32) * 0.1
    return params


def fold_params(params, categorical_info, matmul_dtype=jnp.bfloat16):
    """One-time fold of (W1, b1, W2, b2, embeddings) into kernel operands.

    Exact in f32 (the module is purely linear); matmul operands are then cast
    to `matmul_dtype` (bf16) for MXU throughput.  No lane padding of D.
    """
    w1 = jnp.asarray(params["w1"], jnp.float32)            # (C, H)
    b1 = jnp.asarray(params["b1"], jnp.float32).reshape(1, -1)
    w2 = jnp.asarray(params["w2"], jnp.float32)            # (H + sum_emb, D)
    b2 = jnp.asarray(params["b2"], jnp.float32).reshape(1, -1)

    C, H = w1.shape
    D = w2.shape[1]

    w_fused = w1 @ w2[:H]                                   # (C, D)
    b_fused = b1 @ w2[:H] + b2                              # (1, D)  exact f32

    cat_keys = tuple(categorical_info.keys())
    tables, row_offsets, num_categories = [], [], []
    col, row = H, 0
    for key in cat_keys:
        info = categorical_info[key]
        ncat, edim = info["num_categories"], info["embedding_dim"]
        emb = jnp.asarray(params["embeddings"][key], jnp.float32)
        t_k = emb @ w2[col:col + edim]                      # (ncat, D)
        ncat_pad = _round_up(ncat, 16)                      # bf16 sublane pairs
        t_k = jnp.pad(t_k, ((0, ncat_pad - ncat), (0, 0)))
        tables.append(t_k)
        row_offsets.append(row)
        num_categories.append(ncat)
        row += ncat_pad
        col += edim

    t_stacked = jnp.concatenate(tables, axis=0)             # (n_rows, D)

    return {
        "w_fused": w_fused.astype(matmul_dtype),
        "t_stacked": t_stacked.astype(matmul_dtype),
        "b_fused": b_fused,
        "row_offsets": tuple(row_offsets),
        "num_categories": tuple(num_categories),
        "cat_keys": cat_keys,
        "output_dim": D,
    }


# --------------------------------------------------------------------------
# pallas_call wrapper
# --------------------------------------------------------------------------
@functools.partial(
    jax.jit,
    static_argnames=("row_offsets", "num_categories", "block_b", "out_dtype"))
def _pitch_embedding_call(cont, idx, w_fused, t_stacked, b_fused, *,
                          row_offsets, num_categories, block_b, out_dtype):
    B, C = cont.shape
    K = idx.shape[1]
    n_rows, D = t_stacked.shape
    matmul_dtype = w_fused.dtype

    # Ragged tail handled by Pallas block masking: no wrapper padding, and
    # garbage tail rows only touch output rows that are never written back.
    grid = (pl.cdiv(B, block_b),)

    mm_b = jnp.dtype(matmul_dtype).itemsize
    cost = pl.CostEstimate(
        flops=2 * B * D * (C + n_rows),
        transcendentals=0,
        bytes_accessed=(cont.size * 4 + idx.size * 4
                        + w_fused.size * mm_b + t_stacked.size * mm_b
                        + b_fused.size * 4 + B * D * jnp.dtype(out_dtype).itemsize),
    )

    return pl.pallas_call(
        _make_kernel(row_offsets, num_categories, matmul_dtype),
        out_shape=jax.ShapeDtypeStruct((B, D), out_dtype),
        grid_spec=pltpu.PrefetchScalarGridSpec(
            num_scalar_prefetch=0,
            grid=grid,
            in_specs=[
                # batch-tiled activations / packed indices (auto double-buffered)
                pl.BlockSpec((block_b, C), lambda i: (i, 0)),
                pl.BlockSpec((block_b, K), lambda i: (i, 0)),
                # weights / tables / bias stay VMEM-resident (constant index_map)
                pl.BlockSpec((C, D), lambda i: (0, 0)),
                pl.BlockSpec((n_rows, D), lambda i: (0, 0)),
                pl.BlockSpec((1, D), lambda i: (0, 0)),
            ],
            out_specs=pl.BlockSpec((block_b, D), lambda i: (i, 0)),
        ),
        compiler_params=pltpu.CompilerParams(
            dimension_semantics=("parallel",),     # megacore-shard batch (v7x)
            vmem_limit_bytes=32 * 1024 * 1024,     # safe on v5e/v6e/v7x
        ),
        cost_estimate=cost,
    )(cont, idx, w_fused, t_stacked, b_fused)


def pitch_embedding(continuous_inputs, categorical_inputs, folded, *,
                    block_b=None, out_dtype=jnp.float32):
    """Mirrors PitchEmbedding.forward using the folded parameters.

    continuous_inputs : (B, continuous_dim) float32
    categorical_inputs: dict name -> (B,) int
    folded            : output of fold_params(...)
    out_dtype         : set to jnp.bfloat16 if downstream accepts it (halves
                        the dominant HBM write stream); default matches torch.
    """
    cat_keys = folded["cat_keys"]
    B = continuous_inputs.shape[0]
    if block_b is None:
        # Big tiles amortize the ~0.35us/step overhead; target grid >= 4 so
        # both v7x TensorCores get work; cap at 2048 rows (VMEM not binding).
        bb = min(2048, _round_up(pl.cdiv(B, 4), 16))
        block_b = max(8, min(bb, _round_up(B, 8)))
    idx = jnp.stack(
        [jnp.asarray(categorical_inputs[k], jnp.int32) for k in cat_keys],
        axis=1)
    return _pitch_embedding_call(
        jnp.asarray(continuous_inputs, jnp.float32), idx,
        folded["w_fused"], folded["t_stacked"], folded["b_fused"],
        row_offsets=folded["row_offsets"],
        num_categories=folded["num_categories"],
        block_b=int(block_b), out_dtype=out_dtype)


# --------------------------------------------------------------------------
# Pure-JAX reference (matches PyTorch semantics, unfolded f32 params)
# --------------------------------------------------------------------------
def pitch_embedding_ref(continuous_inputs, categorical_inputs, params,
                        categorical_info):
    h = continuous_inputs @ params["w1"] + params["b1"]
    cat_embeds = [jnp.take(params["embeddings"][k],
                           categorical_inputs[k].astype(jnp.int32), axis=0)
                  for k in categorical_info]
    combined = jnp.concatenate([h] + cat_embeds, axis=-1)
    return combined @ params["w2"] + params["b2"]


if __name__ == "__main__":
    batch = 8
    continuous_dim = 16
    output_dim = 32
    categorical_info = {
        "pitch_type":   {"num_categories": 10, "embedding_dim": 8},
        "pitcher_hand": {"num_categories": 3,  "embedding_dim": 4},
    }

    key = jax.random.PRNGKey(0)
    k_params, k_cont, k_c0, k_c1 = jax.random.split(key, 4)

    params = init_params(k_params, continuous_dim, categorical_info, output_dim)
    folded = fold_params(params, categorical_info, matmul_dtype=jnp.bfloat16)

    continuous_inputs = jax.random.normal(
        k_cont, (batch, continuous_dim), jnp.float32)
    categorical_inputs = {
        "pitch_type": jax.random.randint(
            k_c0, (batch,), 0, categorical_info["pitch_type"]["num_categories"],
            jnp.int32),
        "pitcher_hand": jax.random.randint(
            k_c1, (batch,), 0,
            categorical_info["pitcher_hand"]["num_categories"], jnp.int32),
    }

    out = pitch_embedding(continuous_inputs, categorical_inputs, folded)
    out = jax.block_until_ready(out)

    ref = pitch_embedding_ref(continuous_inputs, categorical_inputs, params,
                              categorical_info)
    assert out.shape == (batch, output_dim)
    assert out.dtype == jnp.float32
    # bf16 matmul operands with f32 accumulation -> ~1e-3 abs error at this scale.
    assert jnp.allclose(out, ref, atol=3e-2, rtol=3e-2), "mismatch vs reference"

    print("KERNEL_OK")
</pallas_src>

<mosaic_0001>
module attributes {stable_mosaic.version = 11 : i64} {
  func.func @kernel(%arg0: i32, %arg1: memref<8x16xf32, #tpu.memory_space<vmem>>, %arg2: memref<8x2xi32, #tpu.memory_space<vmem>>, %arg3: memref<16x32xbf16, #tpu.memory_space<vmem>>, %arg4: memref<32x32xbf16, #tpu.memory_space<vmem>>, %arg5: memref<1x32xf32, #tpu.memory_space<vmem>>, %arg6: memref<8x32xf32, #tpu.memory_space<vmem>>) attributes {dimension_semantics = [#tpu.dimension_semantics<parallel>], iteration_bounds = array<i64: 1>, scalar_prefetch = 0 : i64, scratch_operands = 0 : i64, tpu.core_type = #tpu.core_type<tc>, window_params = [{transform_indices = @transform_0, window_bounds = array<i64: 8, 16>}, {transform_indices = @transform_1, window_bounds = array<i64: 8, 2>}, {pipeline_mode = #tpu.pipeline_mode<synchronous>, transform_indices = @transform_2, window_bounds = array<i64: 16, 32>}, {pipeline_mode = #tpu.pipeline_mode<synchronous>, transform_indices = @transform_3, window_bounds = array<i64: 32, 32>}, {pipeline_mode = #tpu.pipeline_mode<synchronous>, transform_indices = @transform_4, window_bounds = array<i64: 1, 32>}, {transform_indices = @transform_5, window_bounds = array<i64: 8, 32>}]} {
    %c0 = arith.constant 0 : index
    %c0_0 = arith.constant 0 : index
    %0 = vector.load %arg1[%c0, %c0_0] : memref<8x16xf32, #tpu.memory_space<vmem>>, vector<8x16xf32>
    %1 = arith.truncf %0 : vector<8x16xf32> to vector<8x16xbf16>
    %c0_1 = arith.constant 0 : index
    %c0_2 = arith.constant 0 : index
    %2 = vector.load %arg3[%c0_1, %c0_2] : memref<16x32xbf16, #tpu.memory_space<vmem>>, vector<16x32xbf16>
    %cst = arith.constant dense<0.000000e+00> : vector<8x32xf32>
    %3 = tpu.matmul %1, %2, %cst {dimension_numbers = #tpu.dot_dimension_numbers<[1], [0], [0], [1], [0, 0, 1, 1], [], []>} : vector<8x16xbf16>, vector<16x32xbf16>, vector<8x32xf32> -> vector<8x32xf32>
    %c0_3 = arith.constant 0 : index
    %c0_4 = arith.constant 0 : index
    %4 = vector.load %arg2[%c0_3, %c0_4] : memref<8x2xi32, #tpu.memory_space<vmem>>, vector<8x2xi32>
    %5 = tpu.iota {dimensions = array<i32: 1>} : vector<8x32xi32>
    %6 = vector.extract_strided_slice %4 {offsets = [0, 0], sizes = [8, 1], strides = [1, 1]} : vector<8x2xi32> to vector<8x1xi32>
    %c0_i32 = arith.constant 0 : i32
    %c9_i32 = arith.constant 9 : i32
    %7 = vector.broadcast %c0_i32 : i32 to vector<8x1xi32>
    %8 = arith.maxsi %7, %6 : vector<8x1xi32>
    %9 = vector.broadcast %c9_i32 : i32 to vector<8x1xi32>
    %10 = arith.minsi %9, %8 : vector<8x1xi32>
    %c0_i32_5 = arith.constant 0 : i32
    %11 = vector.broadcast %c0_i32_5 : i32 to vector<8x1xi32>
    %12 = arith.addi %10, %11 : vector<8x1xi32>
    %13 = vector.broadcast %12 : vector<8x1xi32> to vector<8x32xi32>
    %14 = arith.cmpi eq, %5, %13 : vector<8x32xi32>
    %15 = vector.extract_strided_slice %4 {offsets = [0, 1], sizes = [8, 1], strides = [1, 1]} : vector<8x2xi32> to vector<8x1xi32>
    %c0_i32_6 = arith.constant 0 : i32
    %c2_i32 = arith.constant 2 : i32
    %16 = vector.broadcast %c0_i32_6 : i32 to vector<8x1xi32>
    %17 = arith.maxsi %16, %15 : vector<8x1xi32>
    %18 = vector.broadcast %c2_i32 : i32 to vector<8x1xi32>
    %19 = arith.minsi %18, %17 : vector<8x1xi32>
    %c16_i32 = arith.constant 16 : i32
    %20 = vector.broadcast %c16_i32 : i32 to vector<8x1xi32>
    %21 = arith.addi %19, %20 : vector<8x1xi32>
    %22 = vector.broadcast %21 : vector<8x1xi32> to vector<8x32xi32>
    %23 = arith.cmpi eq, %5, %22 : vector<8x32xi32>
    %24 = arith.ori %14, %23 : vector<8x32xi1>
    %25 = arith.extui %24 : vector<8x32xi1> to vector<8x32xi32>
    %26 = arith.sitofp %25 : vector<8x32xi32> to vector<8x32xf32>
    %27 = arith.truncf %26 : vector<8x32xf32> to vector<8x32xbf16>
    %c0_7 = arith.constant 0 : index
    %c0_8 = arith.constant 0 : index
    %28 = vector.load %arg4[%c0_7, %c0_8] : memref<32x32xbf16, #tpu.memory_space<vmem>>, vector<32x32xbf16>
    %cst_9 = arith.constant dense<0.000000e+00> : vector<8x32xf32>
    %29 = tpu.matmul %27, %28, %cst_9 {dimension_numbers = #tpu.dot_dimension_numbers<[1], [0], [0], [1], [0, 0, 1, 1], [], []>} : vector<8x32xbf16>, vector<32x32xbf16>, vector<8x32xf32> -> vector<8x32xf32>
    %30 = arith.addf %3, %29 : vector<8x32xf32>
    %c0_10 = arith.constant 0 : index
    %c0_11 = arith.constant 0 : index
    %31 = vector.load %arg5[%c0_10, %c0_11] : memref<1x32xf32, #tpu.memory_space<vmem>>, vector<1x32xf32>
    %32 = vector.broadcast %31 : vector<1x32xf32> to vector<8x32xf32>
    %33 = arith.addf %30, %32 : vector<8x32xf32>
    %c0_12 = arith.constant 0 : index
    %c0_13 = arith.constant 0 : index
    %34 = vector.load %arg6[%c0_12, %c0_13] : memref<8x32xf32, #tpu.memory_space<vmem>>, vector<8x32xf32>
    tpu.vector_store %arg6[%c0_12, %c0_13], %33 {strides = array<i32>} : memref<8x32xf32, #tpu.memory_space<vmem>>, vector<8x32xf32>,
    return
  }
  func.func @transform_0(%arg0: i32) -> (i32, i32) {
    %c0_i32 = arith.constant 0 : i32
    %c0_i32_0 = arith.constant 0 : i32
    return %arg0, %c0_i32 : i32, i32
  }
  func.func @transform_1(%arg0: i32) -> (i32, i32) {
    %c0_i32 = arith.constant 0 : i32
    %c0_i32_0 = arith.constant 0 : i32
    return %arg0, %c0_i32 : i32, i32
  }
  func.func @transform_2(%arg0: i32) -> (i32, i32) {
    %c0_i32 = arith.constant 0 : i32
    %c0_i32_0 = arith.constant 0 : i32
    %c0_i32_1 = arith.constant 0 : i32
    return %c0_i32, %c0_i32_0 : i32, i32
  }
  func.func @transform_3(%arg0: i32) -> (i32, i32) {
    %c0_i32 = arith.constant 0 : i32
    %c0_i32_0 = arith.constant 0 : i32
    %c0_i32_1 = arith.constant 0 : i32
    return %c0_i32, %c0_i32_0 : i32, i32
  }
  func.func @transform_4(%arg0: i32) -> (i32, i32) {
    %c0_i32 = arith.constant 0 : i32
    %c0_i32_0 = arith.constant 0 : i32
    %c0_i32_1 = arith.constant 0 : i32
    return %c0_i32, %c0_i32_0 : i32, i32
  }
  func.func @transform_5(%arg0: i32) -> (i32, i32) {
    %c0_i32 = arith.constant 0 : i32
    %c0_i32_0 = arith.constant 0 : i32
    return %arg0, %c0_i32 : i32, i32
  }
}

</mosaic_0001>

<bundles_post_ra>
// kernel: _pitch_embedding_call.1
= control target key start
LH: loop header
LB: loop body
LE: loop exit
PB: predicated region body
PF: predicated region fallthrough
CT: control target
= control target key end

     0   :  { %10 = vsyncpa [#allocation3], 0  ;;  %s417_s0 = inlined_call_operand.hbm [shape: f32[8,16], index: 0, kind: input, shape index: {}]   ;;  %s418_s1 = inlined_call_operand.vmem [shape: s32[8,2], index: 1, kind: input, shape index: {}]   ;;  %s419_s2 = inlined_call_operand.hbm [shape: bf16[16,32], index: 2, kind: input, shape index: {}]   ;;  %s420_s3 = inlined_call_operand.vmem [shape: bf16[32,32], index: 3, kind: input, shape index: {}]   ;;  %s421_s4 = inlined_call_operand.vmem [shape: f32[1,32], index: 4, kind: input, shape index: {}]   ;;  %s422_s5 = inlined_call_operand.hbm [shape: f32[8,32], index: 5, kind: output, shape index: {}]  }
   0x1   :  { %11 = vsyncpa [#allocation6], 0 }
   0x2   :  { %12 = vsyncpa [#allocation4], 0  ;;  %s321_s18 = smov [#allocation2]   ;;  %s322_s20 = smov [#allocation5]  }
   0x3   :  { %s19_s19 = sshll.u32 %s321_s18, 4  ;;  %s30_s21 = sshll.u32 %s322_s20, 4  ;;  %s20_s19 = int_to_ptr.vmem [resolvable:$true] %s19_s19  ;;  %s360_s21 = int_to_ptr.vmem [resolvable:$true] %s30_s21 }
   0x4   :  { %s249_s24 = scalar_lea.hbm %s417_s0, 128 }
   0x5   :  { %p250_p0 = scmp.ne.s32.totalorder %s417_s0, %s249_s24  ;;  %p253_p1 = scmp.lt.u32.totalorder %s249_s24, %s417_s0 }
   0x7   :  { %p255_p2 = pnand %p253_p1, %p250_p0 }
   0x9   :  { %258 = shalt.err (!%p255_p2)
}
   0xa   :  { %s259_s29 = scalar_lea.vmem %s20_s19, 128  ;;  %p264_p4 = scmp.lt.s32.totalorder %s20_s19, %s20_s19 }
   0xb   :  { %p260_p3 = scmp.ne.s32.totalorder %s20_s19, %s259_s29  ;;  %p265_p5 = scmp.lt.s32.totalorder %s259_s29, %s259_s29 }
   0xd   :  { %p266_p6 = por %p265_p5, %p264_p4 }
   0xf   :  { %p267_p7 = pnand %p266_p6, %p260_p3 }
  0x11   :  { %270 = shalt.err (!%p267_p7)
}
  0x12   :  { %22 = dma.hbm_to_vmem [thread:$0]  %s417_s0, 128, %s20_s19, [#allocation3]  }
  0x13   :  { %s271_s9 = scalar_lea.hbm %s419_s2, 128 }
  0x14   :  { %p272_p8 = scmp.ne.s32.totalorder %s419_s2, %s271_s9  ;;  %p275_p9 = scmp.lt.u32.totalorder %s271_s9, %s419_s2 }
  0x16   :  { %p277_p10 = pnand %p275_p9, %p272_p8 }
  0x18   :  { %280 = shalt.err (!%p277_p10)
}
  0x19   :  { %s281_s14 = scalar_lea.vmem %s360_s21, 128  ;;  %p286_p12 = scmp.lt.s32.totalorder %s360_s21, %s360_s21 }
  0x1a   :  { %p282_p11 = scmp.ne.s32.totalorder %s360_s21, %s281_s14  ;;  %p287_p13 = scmp.lt.s32.totalorder %s281_s14, %s281_s14 }
  0x1c   :  { %p288_p0 = por %p287_p13, %p286_p12 }
  0x1e   :  { %p289_p1 = pnand %p288_p0, %p282_p11 }
  0x20   :  { %292 = shalt.err (!%p289_p1)
}
  0x21   :  { %s323_s0 = smov 64   ;;  %s324_s15 = smov 4  }
  0x22   :  { %36 = dma.hbm_to_vmem [thread:$0]  %s419_s2, 128, %s360_s21, [#allocation6], %s323_s0, %s323_s0, %s324_s15  }
  0x23   :  { %315 = dma.done.wait [#allocation3], 128  }
  0x24   :  { %316 = vsyncadd [#allocation3], 4294967168 }
  0x25   :  { %317 = dma.done.wait [#allocation6], 128  }
  0x26   :  { %318 = vsyncadd [#allocation6], 4294967168  ;;  %v325_v0 = vmov 0   ;;  %v52_v1 = vld [vmem:[%s418_s1] sm:$0xff]  ;;  %v326_v7 = vmov 0.0   ;;  %v247_v8 = vld [vmem:[#allocation5] sm:$0xff]   ;;  %v53_v13 = vlaneseq }
  0x27   :  { %244 = vset.pattern.permute.xlu0 %v325_v0  ;;  %vm55_vm0 = vcmp.gt.s32.totalorder %v52_v1, 0  ;;  %v246_v5 = vld [vmem:[%s420_s3] sm:$0xff]   ;;  %221 = vmatprep.subr.bf16.mxu0 %v326_v7  ;;  %v327_v9 = vmov 1   ;;  %v248_v11 = vld [vmem:[%s420_s3 + $0x8] sm:$0xff]   ;;  %vm328_vm3 = vmmov 0   ;;  %vm140_vm4 = vcmask 130048  }
  0x28   :  { %v56_v2 = vsel %vm55_vm0, %v52_v1, 0  ;;  %229 = vmatprep.subr.bf16.mxu1 %v326_v7  ;;  %222 = vmatpush3.bf16.msra.mxu0 %v246_v5  ;;  %v48_v10 = vld [vmem:[#allocation2] sm:$0xff]  ;;  %v54_v15 = vand.u32 127, %v53_v13  ;;  %vm90_vm8 = vcmask 261120   ;;  %s329_s23 = smov [#allocation7]  }
  0x29   :  { %vm57_vm1 = vcmp.lt.s32.totalorder %v56_v2, 9  ;;  %vm63_vm2 = vcmp.lt.s32.totalorder %v56_v2, 2  ;;  %223 = vmatprep.subr.bf16.mxu0 %v326_v7  ;;  %230 = vmatpush3.bf16.msra.mxu1 %v247_v8  ;;  %v49_v12 = vpack.c.bf16 %v48_v10, %v48_v10  ;;  %v215_v24 = vld [vmem:[%s421_s4] ss:$0 sm:$0xff]  ;;  %s199_s24 = sshll.u32 %s329_s23, 4  ;;  %s200_s24 = int_to_ptr.vmem [resolvable:$true] %s199_s24 }
  0x2a   :  { %v58_v3 = vsel %vm57_vm1, %v56_v2, 9  ;;  %v64_v4 = vsel %vm63_vm2, %v56_v2, 2  ;;  %231 = vmatprep.mubr.msk.bf16.mxu1 %vm328_vm3, %v326_v7  ;;  %225 = vmatprep.mubr.msk.bf16.mxu0 %vm328_vm3, %v326_v7  ;;  %s293_s25 = scalar_lea.vmem %s200_s24, 128  ;;  %p298_p3 = scmp.lt.s32.totalorder %s200_s24, %s200_s24 }
  0x2b   :  { %60 = vperm.xlu0 %244, %v58_v3   ;;  %v65_v6 = vadd.s32 16, %v64_v4  ;;  %p294_p2 = scmp.ne.s32.totalorder %s200_s24, %s293_s25  ;;  %p299_p4 = scmp.lt.s32.totalorder %s293_s25, %s293_s25 }
  0x2c   :  { %224 = vmatpush3.bf16.msra.mxu0 %v248_v11  ;;  %232 = vmatmul.mubr.msk.bf16.vlgmr.msra.gmra.mrb[0].mxu1 %vm140_vm4, %v49_v12 }
  0x2d   :  { %p300_p5 = por %p299_p4, %p298_p3 }
  0x2f   :  { %245 = vset.pattern.permute.xlu0 %v327_v9  ;;  %p301_p6 = pnand %p300_p5, %p294_p2 }
  0x30   :  { %67 = vperm.xlu0 %245, %v65_v6  }
  0xaa   :  { %v61_v14 = vpop.permute.xlu0 %60 }
  0xab   :  { %vm62_vm5 = vcmp.eq.s32.totalorder %v54_v15, %v61_v14 }
  0xaf   :  { %v68_v16 = vpop.permute.xlu0 %67 }
  0xb0   :  { %vm69_vm6 = vcmp.eq.s32.totalorder %v54_v15, %v68_v16 }
  0xb1   :  { %vm70_vm7 = vmor %vm62_vm5, %vm69_vm6 }
  0xb2   :  { %v209_v17 = vsel %vm70_vm7, 1.0, %v326_v7 }
  0xb3   :  { %v73_v18 = vpack.c.bf16 %v209_v17, %v209_v17 }
  0xb5   :  { %226 = vmatmul.mubr.msk.bf16.vlgmr.msra.gmra.mrb[0].mxu0 %vm90_vm8, %v73_v18 }
  0xff   :  { %v178_v19 = vpop.f32.mrb[0].mxu1 }
 0x100   :  { %v233_v20 = vpop.f32.mrb[1].mxu1 }
 0x101   :  { %v181_v21 = vpop.f32.mrb[2].mxu1 }
 0x102   :  { %v234_v22 = vpop.f32.mrb[3].mxu1 }
 0x188   :  { %v128_v23 = vpop.f32.mrb[0].mxu0 }
 0x189   :  { %v179_v25 = vadd.f32 %v178_v19, %v128_v23  ;;  %v227_v26 = vpop.f32.mrb[1].mxu0 }
 0x18a   :  { %v131_v27 = vpop.f32.mrb[2].mxu0 }
 0x18b   :  { %v191_v28 = vadd.f32 %v215_v24, %v179_v25  ;;  %v228_v29 = vpop.f32.mrb[3].mxu0 }
 0x18d   :  { %192 = vst.msk [vmem:[#allocation7] sm:$0xff] %vm90_vm8, %v191_v28 }
 0x18e   :  { %304 = shalt.err (!%p301_p6)
}
 0x18f   :  { %s305_s4 = scalar_lea.hbm %s422_s5, 128 }
 0x190   :  { %p306_p7 = scmp.ne.s32.totalorder %s422_s5, %s305_s4  ;;  %p309_p8 = scmp.lt.u32.totalorder %s305_s4, %s422_s5 }
 0x192   :  { %p311_p9 = pnand %p309_p8, %p306_p7 }
 0x194   :  { %314 = shalt.err (!%p311_p9)
}
 0x195   :  { %202 = dma.vmem_to_hbm [thread:$0]  %s200_s24, 128, %s422_s5, [#allocation4]  }
 0x196   :  { %319 = dma.done.wait [#allocation4], 128  }
 0x197   :  { %320 = vsyncadd [#allocation4], 4294967168 }
 0x198   :  { %206 = vsyncpa [#allocation3], 1 }
 0x199   :  { %207 = vsyncpa [#allocation6], 1 }
 0x19a   :  { %208 = vsyncpa [#allocation4], 1 }

</bundles_post_ra>
